<compile_context>
chip_gen: v7x
topology: tpu7x:2x2x1
jax: 0.10.0
libtpu: 0.0.40
codegen_flags: <defaults>
</compile_context>

<pallas_src>
import jax
import jax.numpy as jnp
from jax.experimental import pallas as pl
from jax.experimental.pallas import tpu as pltpu


# ----------------------------------------------------------------------------
# Kernels
# ----------------------------------------------------------------------------
def _identity_noop_kernel(x_ref, o_ref):
    # Output buffer aliases the input buffer (input_output_aliases={0: 0});
    # the data is already in place, so the body does no data movement.
    # touch() records a read/write dependency so the kernel is well-formed
    # and kept by the compiler.
    pltpu.touch(x_ref)
    pltpu.touch(o_ref)


def _identity_dma_copy_kernel(x_hbm_ref, o_hbm_ref, sem):
    # Single whole-array HBM -> HBM DMA: no VMEM staging, one start/wait.
    cp = pltpu.make_async_copy(x_hbm_ref, o_hbm_ref, sem)
    cp.start()
    cp.wait()


# ----------------------------------------------------------------------------
# pallas_call wrappers
# ----------------------------------------------------------------------------
def _identity_alias_noop(x):
    """Zero-traffic identity: aliased output, no-op body, operands in HBM."""
    return pl.pallas_call(
        _identity_noop_kernel,
        out_shape=jax.ShapeDtypeStruct(x.shape, x.dtype),
        in_specs=[pl.BlockSpec(memory_space=pl.ANY)],
        out_specs=pl.BlockSpec(memory_space=pl.ANY),
        input_output_aliases={0: 0},
        compiler_params=pltpu.CompilerParams(has_side_effects=True),
    )(x)


def _identity_hbm_dma_copy(x):
    """Fallback identity: one whole-array HBM->HBM DMA (no aliasing assumed)."""
    itemsize = jnp.dtype(x.dtype).itemsize
    return pl.pallas_call(
        _identity_dma_copy_kernel,
        out_shape=jax.ShapeDtypeStruct(x.shape, x.dtype),
        in_specs=[pl.BlockSpec(memory_space=pl.ANY)],
        out_specs=pl.BlockSpec(memory_space=pl.ANY),
        scratch_shapes=[pltpu.SemaphoreType.DMA],
        cost_estimate=pl.CostEstimate(
            flops=0,
            transcendentals=0,
            bytes_accessed=2 * int(x.size) * itemsize,
        ),
    )(x)


def identity_module_forward(x, *args, **kwargs):
    """Pallas equivalent of IdentityModule.forward(x, *args, **kwargs) -> x.

    NOTE: the zero-cost production implementation is simply `return x`; a
    pallas_call is kept because the deliverable is a kernel, made as close to
    free as possible (aliased, no-op, zero HBM traffic when x is donated).
    """
    del args, kwargs  # ignored, exactly as in the PyTorch module
    try:
        return _identity_alias_noop(x)
    except Exception:
        # Conservative fallback if the no-op/alias lowering is unavailable:
        # a single HBM->HBM DMA copy (still far cheaper than a tiled VMEM copy).
        return _identity_hbm_dma_copy(x)


def make_identity_module_params(in_channels, key):
    """Mirror nn.Linear(in_channels, 0) + identity buffer: zero-sized, unused."""
    del key  # zero-sized params; nothing to sample
    return {
        "regressor_weight": jnp.zeros((0, in_channels), dtype=jnp.float32),
        "regressor_bias": jnp.zeros((0,), dtype=jnp.float32),
        "identity": jnp.zeros((0,), dtype=jnp.float32),
    }


# ----------------------------------------------------------------------------
# Demo / self-test
# ----------------------------------------------------------------------------
if __name__ == "__main__":
    key = jax.random.PRNGKey(0)
    k_x, k_p = jax.random.split(key)

    # Small NCHW input consistent with an image-transformation module.
    N, C, H, W = 2, 4, 16, 16
    x = jax.random.normal(k_x, (N, C, H, W), dtype=jnp.float32)

    # Unused (zero-width) parameters, constructed only for shape fidelity.
    params = make_identity_module_params(in_channels=C, key=k_p)

    y = identity_module_forward(x)
    y = jax.block_until_ready(y)

    assert y.shape == x.shape and y.dtype == x.dtype
    assert bool(jnp.all(y == x))

    print("KERNEL_OK")
</pallas_src>

<mosaic_0001>
module attributes {stable_mosaic.version = 11 : i64} {
  func.func @_identity_noop_kernel(%arg0: memref<2x4x16x16xf32, #tpu.memory_space<any>>, %arg1: memref<2x4x16x16xf32, #tpu.memory_space<any>>) attributes {dimension_semantics = [], scalar_prefetch = 0 : i64, scratch_operands = 0 : i64, tpu.core_type = #tpu.core_type<tc>} {
    return
  }
}

module attributes {stable_mosaic.version = 11 : i64} {
  func.func @_identity_dma_copy_kernel(%arg0: memref<2x4x16x16xf32, #tpu.memory_space<any>>, %arg1: memref<2x4x16x16xf32, #tpu.memory_space<any>>, %arg2: memref<!tpu.dma_semaphore, #tpu.memory_space<semaphore_mem>>) attributes {dimension_semantics = [], scalar_prefetch = 0 : i64, scratch_operands = 1 : i64, tpu.core_type = #tpu.core_type<tc>} {
    tpu.enqueue_dma source(%arg0 : memref<2x4x16x16xf32, #tpu.memory_space<any>>) target(%arg1 : memref<2x4x16x16xf32, #tpu.memory_space<any>>) target_semaphore(%arg2 : memref<!tpu.dma_semaphore, #tpu.memory_space<semaphore_mem>>)
    tpu.wait_dma2 semaphore(%arg2 : memref<!tpu.dma_semaphore, #tpu.memory_space<semaphore_mem>>) src(%arg0 : memref<2x4x16x16xf32, #tpu.memory_space<any>>) dst(%arg1 : memref<2x4x16x16xf32, #tpu.memory_space<any>>)
    return
  }
}

</mosaic_0001>

<bundles_post_ra>
// kernel: tpu_custom_call.1
= control target key start
LH: loop header
LB: loop body
LE: loop exit
PB: predicated region body
PF: predicated region fallthrough
CT: control target
= control target key end

     0   :  { %s16_s0 = inlined_call_operand.hbm [shape: f32[2,4,16,16], index: 0, kind: input, shape index: {}, may-alias: {0,1}]   ;;  %s17_s1 = inlined_call_operand.hbm [shape: f32[2,4,16,16], index: 1, kind: output, shape index: {}, may-alias: {0,1}]  }

// kernel: tpu_custom_call.1
= control target key start
LH: loop header
LB: loop body
LE: loop exit
PB: predicated region body
PF: predicated region fallthrough
CT: control target
= control target key end

     0   :  { %s36_s6 = smov [#allocation2]   ;;  %s37_s7 = smov [#allocation3]   ;;  %s55_s0 = inlined_call_operand.hbm [shape: f32[2,4,16,16], index: 0, kind: input, shape index: {}]   ;;  %s56_s1 = inlined_call_operand.hbm [shape: f32[2,4,16,16], index: 1, kind: output, shape index: {}]  }
   0x1   :  { %s38_s8 = smov 0  }
   0x2   :  { %18 = dma.general %s55_s0, 2048, %s56_s1, %s36_s6, %s37_s7, [#allocation4], %s38_s8, 0  }
   0x3   :  { %34 = dma.done.wait [#allocation2], 2048 }
   0x4   :  { %35 = vsyncadd [#allocation2], 4294965248 }
   0x5   :  { %24 = vsyncmov [#allocation2] }
   0x8   :  { %s25_s13 = vpop.sfrf %24 }
   0x9   :  { %p30_p0 = scmp.ne.s32.totalorder %s25_s13, 0 }
   0xb   :  { %29 = shalt.err (%p30_p0)  }

</bundles_post_ra>
